<compile_context>
chip_gen: v7x
topology: tpu7x:2x2x1
jax: 0.10.0
libtpu: 0.0.40
codegen_flags: <defaults>
</compile_context>

<pallas_src>
import math
import functools

import jax
import jax.numpy as jnp
from jax.experimental import pallas as pl
from jax.experimental.pallas import tpu as pltpu


_HIDDEN = 64
_TILE_CAP = 2048        # max batch-tile rows (multiple of 8)
_SPLIT_THRESHOLD = 512  # above this, use >=2 grid steps (v7x megacore / 2 TCs)


def _round_up(x, m):
    return ((x + m - 1) // m) * m


def _choose_tile(batch):
    """Pick the batch tile.

    - batch <= 512: single full-array block (zero extra per-step overhead).
    - 512 < batch <= 2*cap: split into exactly 2 steps (both v7x TCs busy),
      tile rounded up to a multiple of 8 (BlockSpec sublane constraint).
    - larger: cap-sized tiles, grid = cdiv(batch, cap), trailing partial
      block handled by Pallas masking.
    """
    if batch <= _SPLIT_THRESHOLD:
        return batch
    if batch <= 2 * _TILE_CAP:
        return min(_round_up(pl.cdiv(batch, 2), 8), _TILE_CAP)
    return _TILE_CAP


# -----------------------------------------------------------------------------
# Kernel (handles both trans_types and action_dim==0 via static flags)
# -----------------------------------------------------------------------------
def _transition_kernel(*refs, trans_type, has_action, compute_dtype):
    """Fused cat -> linear (-> relu -> linear -> relu -> linear) on one batch tile."""
    it = iter(refs)
    z = next(it)[...]
    a = next(it)[...] if has_action else None
    o_ref = refs[-1]

    def dot(x, w_ref):
        # weights are already stored in compute_dtype (pre-cast in __init__)
        return jnp.dot(
            x.astype(compute_dtype),
            w_ref[...],
            preferred_element_type=jnp.float32,
        )

    if trans_type == "linear":
        y = dot(z, next(it))
        if has_action:
            y = y + dot(a, next(it))
    else:  # mlp
        h = dot(z, next(it))
        if has_action:
            h = h + dot(a, next(it))
        b1 = next(it)[...]
        h = jnp.maximum(h + b1, 0.0)          # bias add / ReLU stay f32 (v5e-safe)
        w2, b2 = next(it), next(it)
        h = jnp.maximum(dot(h, w2) + b2[...], 0.0)
        w3, b3 = next(it), next(it)
        y = dot(h, w3) + b3[...]

    o_ref[...] = y.astype(o_ref.dtype)


# -----------------------------------------------------------------------------
# Parameter init (matches nn.Linear defaults), stored as [in, out]
# -----------------------------------------------------------------------------
def _linear_init(key, fan_in, fan_out, bias=True, dtype=jnp.float32):
    kw, kb = jax.random.split(key)
    bound = 1.0 / math.sqrt(fan_in)
    w = jax.random.uniform(kw, (fan_in, fan_out), dtype, minval=-bound, maxval=bound)
    if not bias:
        return w, None
    b = jax.random.uniform(kb, (1, fan_out), dtype, minval=-bound, maxval=bound)
    return w, b


# -----------------------------------------------------------------------------
# Module wrapper
# -----------------------------------------------------------------------------
class TransitionSimple:
    prefix = "transition"

    def __init__(self, z_dim, action_dim=0, trans_type="linear", *,
                 key=None, compute_dtype=jnp.float32):
        # compute_dtype=jnp.bfloat16: weights stored bf16, MXU operands bf16,
        # f32 accumulation.  Pass bf16 z/a as well to halve activation HBM
        # bytes (the real win: this op is bandwidth-bound).  Default f32 keeps
        # exact parity with the f32 reference.
        if key is None:
            key = jax.random.PRNGKey(0)
        if trans_type not in ("linear", "mlp"):
            raise Exception("Invalid trans_type", trans_type)
        self.trans_type = trans_type
        self.z_dim = z_dim
        self.action_dim = action_dim
        self.compute_dtype = compute_dtype
        in_dim = z_dim + action_dim
        has_action = action_dim > 0

        def wcast(w):  # weight matrices in compute_dtype; biases stay f32
            return w.astype(compute_dtype)

        if trans_type == "linear":
            w, _ = _linear_init(key, in_dim, z_dim, bias=False)
            params = [wcast(w[:z_dim])]
            if has_action:
                params.append(wcast(w[z_dim:]))
            self.params = tuple(params)
        else:  # mlp
            k1, k2, k3 = jax.random.split(key, 3)
            w1, b1 = _linear_init(k1, in_dim, _HIDDEN)
            w2, b2 = _linear_init(k2, _HIDDEN, _HIDDEN)
            w3, b3 = _linear_init(k3, _HIDDEN, z_dim)
            params = [wcast(w1[:z_dim])]
            if has_action:
                params.append(wcast(w1[z_dim:]))
            params += [b1, wcast(w2), b2, wcast(w3), b3]
            self.params = tuple(params)

    def __call__(self, z, a=None):
        batch = z.shape[0]
        has_action = self.action_dim > 0

        tb = _choose_tile(batch)
        grid = (pl.cdiv(batch, tb),)

        # NOTE: z and a are kept as two input streams (split dot) rather than
        # host-concatenated: a host concat would be an extra full XLA pass
        # over the activations, and the degenerate K=action_dim MXU push is
        # free here (the binding slots are DMA/store, not vmatmul).
        inputs = [z]
        if has_action:
            inputs.append(a)
        inputs.extend(self.params)
        n_act = 2 if has_action else 1

        def act_spec(arr):
            return pl.BlockSpec((tb, arr.shape[1]), lambda i: (i, 0))

        def resident_spec(arr):  # whole (tiny) weight/bias stays in VMEM
            return pl.BlockSpec(arr.shape, lambda i: (0,) * arr.ndim)

        in_specs = [act_spec(x) for x in inputs[:n_act]]
        in_specs += [resident_spec(p) for p in self.params]

        kernel = functools.partial(
            _transition_kernel,
            trans_type=self.trans_type,
            has_action=has_action,
            compute_dtype=self.compute_dtype,
        )

        return pl.pallas_call(
            kernel,
            out_shape=jax.ShapeDtypeStruct((batch, self.z_dim), z.dtype),
            grid=grid,
            in_specs=in_specs,
            out_specs=pl.BlockSpec((tb, self.z_dim), lambda i: (i, 0)),
            compiler_params=pltpu.CompilerParams(
                dimension_semantics=("parallel",)),
        )(*inputs)

    # pure-JAX reference for correctness checking
    def reference(self, z, a=None):
        has_action = self.action_dim > 0
        params = [p.astype(jnp.float32) for p in self.params]
        if self.trans_type == "linear":
            y = z @ params.pop(0)
            if has_action:
                y = y + a @ params.pop(0)
            return y
        h = z @ params.pop(0)
        if has_action:
            h = h + a @ params.pop(0)
        b1, w2, b2, w3, b3 = params
        h = jnp.maximum(h + b1, 0.0)
        h = jnp.maximum(h @ w2 + b2, 0.0)
        return h @ w3 + b3


# -----------------------------------------------------------------------------
if __name__ == "__main__":
    key = jax.random.PRNGKey(0)
    k_z, k_a, k_p1, k_p2, k_zl, k_al, k_zh, k_ah = jax.random.split(key, 8)

    batch, z_dim, action_dim = 8, 32, 8
    z = jax.random.normal(k_z, (batch, z_dim), jnp.float32)
    a = jax.random.normal(k_a, (batch, action_dim), jnp.float32)

    ok = True

    # default path: trans_type='linear' (small batch, single block)
    mod_lin = TransitionSimple(z_dim, action_dim, trans_type="linear", key=k_p1)
    out_lin = jax.block_until_ready(mod_lin(z, a))
    ok &= bool(jnp.allclose(out_lin, mod_lin.reference(z, a), atol=1e-5, rtol=1e-5))
    ok &= out_lin.shape == (batch, z_dim)

    # mlp path (small batch)
    mod_mlp = TransitionSimple(z_dim, action_dim, trans_type="mlp", key=k_p2)
    out_mlp = jax.block_until_ready(mod_mlp(z, a))
    ok &= bool(jnp.allclose(out_mlp, mod_mlp.reference(z, a), atol=1e-5, rtol=1e-5))
    ok &= out_mlp.shape == (batch, z_dim)

    # non-divisible larger batch: 2-step grid + trailing partial block (masked
    # writeback, no host pad/slice)
    big = 1030
    zl = jax.random.normal(k_zl, (big, z_dim), jnp.float32)
    al = jax.random.normal(k_al, (big, action_dim), jnp.float32)
    out_big = jax.block_until_ready(mod_mlp(zl, al))
    ok &= bool(jnp.allclose(out_big, mod_mlp.reference(zl, al), atol=1e-5, rtol=1e-5))
    ok &= out_big.shape == (big, z_dim)

    # batch hitting the tile cap exactly: 2 full 2048-row tiles
    huge = 4096
    zh = jax.random.normal(k_zh, (huge, z_dim), jnp.float32)
    ah = jax.random.normal(k_ah, (huge, action_dim), jnp.float32)
    out_huge = jax.block_until_ready(mod_lin(zh, ah))
    ok &= bool(jnp.allclose(out_huge, mod_lin.reference(zh, ah), atol=1e-5, rtol=1e-5))
    ok &= out_huge.shape == (huge, z_dim)

    print("KERNEL_OK" if ok else "KERNEL_MISMATCH")
</pallas_src>

<mosaic_0001>
module attributes {stable_mosaic.version = 11 : i64} {
  func.func @_transition_kernel(%arg0: i32, %arg1: memref<8x32xf32, #tpu.memory_space<vmem>>, %arg2: memref<8x8xf32, #tpu.memory_space<vmem>>, %arg3: memref<32x32xf32, #tpu.memory_space<vmem>>, %arg4: memref<8x32xf32, #tpu.memory_space<vmem>>, %arg5: memref<8x32xf32, #tpu.memory_space<vmem>>) attributes {dimension_semantics = [#tpu.dimension_semantics<parallel>], iteration_bounds = array<i64: 1>, scalar_prefetch = 0 : i64, scratch_operands = 0 : i64, tpu.core_type = #tpu.core_type<tc>, window_params = [{transform_indices = @transform_0, window_bounds = array<i64: 8, 32>}, {transform_indices = @transform_1, window_bounds = array<i64: 8, 8>}, {pipeline_mode = #tpu.pipeline_mode<synchronous>, transform_indices = @transform_2, window_bounds = array<i64: 32, 32>}, {pipeline_mode = #tpu.pipeline_mode<synchronous>, transform_indices = @transform_3, window_bounds = array<i64: 8, 32>}, {transform_indices = @transform_4, window_bounds = array<i64: 8, 32>}]} {
    %c0 = arith.constant 0 : index
    %c0_0 = arith.constant 0 : index
    %0 = vector.load %arg1[%c0, %c0_0] : memref<8x32xf32, #tpu.memory_space<vmem>>, vector<8x32xf32>
    %c0_1 = arith.constant 0 : index
    %c0_2 = arith.constant 0 : index
    %1 = vector.load %arg2[%c0_1, %c0_2] : memref<8x8xf32, #tpu.memory_space<vmem>>, vector<8x8xf32>
    %c0_3 = arith.constant 0 : index
    %c0_4 = arith.constant 0 : index
    %2 = vector.load %arg3[%c0_3, %c0_4] : memref<32x32xf32, #tpu.memory_space<vmem>>, vector<32x32xf32>
    %cst = arith.constant dense<0.000000e+00> : vector<8x32xf32>
    %3 = tpu.matmul %0, %2, %cst {dimension_numbers = #tpu.dot_dimension_numbers<[1], [0], [0], [1], [0, 0, 1, 1], [], []>} : vector<8x32xf32>, vector<32x32xf32>, vector<8x32xf32> -> vector<8x32xf32>
    %c0_5 = arith.constant 0 : index
    %c0_6 = arith.constant 0 : index
    %4 = vector.load %arg4[%c0_5, %c0_6] : memref<8x32xf32, #tpu.memory_space<vmem>>, vector<8x32xf32>
    %cst_7 = arith.constant dense<0.000000e+00> : vector<8x32xf32>
    %5 = tpu.matmul %1, %4, %cst_7 {dimension_numbers = #tpu.dot_dimension_numbers<[1], [0], [0], [1], [0, 0, 1, 1], [], []>} : vector<8x8xf32>, vector<8x32xf32>, vector<8x32xf32> -> vector<8x32xf32>
    %6 = arith.addf %3, %5 : vector<8x32xf32>
    %c0_8 = arith.constant 0 : index
    %c0_9 = arith.constant 0 : index
    %7 = vector.load %arg5[%c0_8, %c0_9] : memref<8x32xf32, #tpu.memory_space<vmem>>, vector<8x32xf32>
    tpu.vector_store %arg5[%c0_8, %c0_9], %6 {strides = array<i32>} : memref<8x32xf32, #tpu.memory_space<vmem>>, vector<8x32xf32>,
    return
  }
  func.func @transform_0(%arg0: i32) -> (i32, i32) {
    %c0_i32 = arith.constant 0 : i32
    %c0_i32_0 = arith.constant 0 : i32
    return %arg0, %c0_i32 : i32, i32
  }
  func.func @transform_1(%arg0: i32) -> (i32, i32) {
    %c0_i32 = arith.constant 0 : i32
    %c0_i32_0 = arith.constant 0 : i32
    return %arg0, %c0_i32 : i32, i32
  }
  func.func @transform_2(%arg0: i32) -> (i32, i32) {
    %c0_i32 = arith.constant 0 : i32
    %c0_i32_0 = arith.constant 0 : i32
    %c0_i32_1 = arith.constant 0 : i32
    return %c0_i32, %c0_i32_0 : i32, i32
  }
  func.func @transform_3(%arg0: i32) -> (i32, i32) {
    %c0_i32 = arith.constant 0 : i32
    %c0_i32_0 = arith.constant 0 : i32
    %c0_i32_1 = arith.constant 0 : i32
    return %c0_i32, %c0_i32_0 : i32, i32
  }
  func.func @transform_4(%arg0: i32) -> (i32, i32) {
    %c0_i32 = arith.constant 0 : i32
    %c0_i32_0 = arith.constant 0 : i32
    return %arg0, %c0_i32 : i32, i32
  }
}

</mosaic_0001>

<bundles_post_ra>
// kernel: tpu_custom_call.1
= control target key start
LH: loop header
LB: loop body
LE: loop exit
PB: predicated region body
PF: predicated region fallthrough
CT: control target
= control target key end

     0   :  { %9 = vsyncpa [#allocation3], 0  ;;  %s447_s0 = inlined_call_operand.hbm [shape: f32[8,32], index: 0, kind: input, shape index: {}]   ;;  %s448_s1 = inlined_call_operand.hbm [shape: f32[8,8], index: 1, kind: input, shape index: {}]   ;;  %s449_s2 = inlined_call_operand.hbm [shape: f32[32,32], index: 2, kind: input, shape index: {}]   ;;  %s450_s3 = inlined_call_operand.vmem [shape: f32[8,32], index: 3, kind: input, shape index: {}]   ;;  %s451_s4 = inlined_call_operand.hbm [shape: f32[8,32], index: 4, kind: output, shape index: {}]  }
   0x1   :  { %10 = vsyncpa [#allocation6], 0 }
   0x2   :  { %11 = vsyncpa [#allocation4], 0  ;;  %s362_s15 = smov [#allocation5]   ;;  %s363_s17 = smov [#allocation2]  }
   0x3   :  { %s28_s16 = sshll.u32 %s362_s15, 4  ;;  %s18_s18 = sshll.u32 %s363_s17, 4  ;;  %s29_s16 = int_to_ptr.vmem [resolvable:$true] %s28_s16  ;;  %s19_s18 = int_to_ptr.vmem [resolvable:$true] %s18_s18 }
   0x4   :  { %s268_s21 = scalar_lea.hbm %s448_s1, 128 }
   0x5   :  { %p269_p0 = scmp.ne.s32.totalorder %s448_s1, %s268_s21  ;;  %p272_p1 = scmp.lt.u32.totalorder %s268_s21, %s448_s1 }
   0x7   :  { %p274_p2 = pnand %p272_p1, %p269_p0 }
   0x9   :  { %277 = shalt.err (!%p274_p2)
}
   0xa   :  { %s278_s26 = scalar_lea.vmem %s29_s16, 128  ;;  %p283_p4 = scmp.lt.s32.totalorder %s29_s16, %s29_s16 }
   0xb   :  { %p279_p3 = scmp.ne.s32.totalorder %s29_s16, %s278_s26  ;;  %p284_p5 = scmp.lt.s32.totalorder %s278_s26, %s278_s26 }
   0xd   :  { %p285_p6 = por %p284_p5, %p283_p4 }
   0xf   :  { %p286_p7 = pnand %p285_p6, %p279_p3 }
  0x11   :  { %289 = shalt.err (!%p286_p7)
}
  0x12   :  { %31 = dma.hbm_to_vmem [thread:$0]  %s448_s1, 128, %s29_s16, [#allocation6]  }
  0x13   :  { %s290_s5 = scalar_lea.hbm %s447_s0, 128 }
  0x14   :  { %p291_p8 = scmp.ne.s32.totalorder %s447_s0, %s290_s5  ;;  %p294_p9 = scmp.lt.u32.totalorder %s290_s5, %s447_s0 }
  0x16   :  { %p296_p10 = pnand %p294_p9, %p291_p8 }
  0x18   :  { %299 = shalt.err (!%p296_p10)
}
  0x19   :  { %s300_s10 = scalar_lea.vmem %s19_s18, 128  ;;  %p305_p12 = scmp.lt.s32.totalorder %s19_s18, %s19_s18 }
  0x1a   :  { %p301_p11 = scmp.ne.s32.totalorder %s19_s18, %s300_s10  ;;  %p306_p13 = scmp.lt.s32.totalorder %s300_s10, %s300_s10 }
  0x1c   :  { %p307_p0 = por %p306_p13, %p305_p12 }
  0x1e   :  { %p308_p1 = pnand %p307_p0, %p301_p11 }
  0x20   :  { %311 = shalt.err (!%p308_p1)
}
  0x21   :  { %21 = dma.hbm_to_vmem [thread:$0]  %s447_s0, 128, %s19_s18, [#allocation3]  }
  0x22   :  { %s364_s12 = smov [#allocation7]   ;;  %s312_s16 = scalar_lea.hbm %s449_s2, 512 }
  0x23   :  { %s37_s13 = sshll.u32 %s364_s12, 4  ;;  %p313_p2 = scmp.ne.s32.totalorder %s449_s2, %s312_s16  ;;  %s38_s13 = int_to_ptr.vmem [resolvable:$true] %s37_s13 }
  0x24   :  { %p316_p3 = scmp.lt.u32.totalorder %s312_s16, %s449_s2 }
  0x26   :  { %p318_p4 = pnand %p316_p3, %p313_p2 }
  0x28   :  { %321 = shalt.err (!%p318_p4)
}
  0x29   :  { %s322_s22 = scalar_lea.vmem %s38_s13, 512  ;;  %p327_p6 = scmp.lt.s32.totalorder %s38_s13, %s38_s13 }
  0x2a   :  { %p323_p5 = scmp.ne.s32.totalorder %s38_s13, %s322_s22  ;;  %p328_p7 = scmp.lt.s32.totalorder %s322_s22, %s322_s22 }
  0x2c   :  { %p329_p8 = por %p328_p7, %p327_p6 }
  0x2e   :  { %p330_p9 = pnand %p329_p8, %p323_p5 }
  0x30   :  { %333 = shalt.err (!%p330_p9)
}
  0x31   :  { %s365_s0 = smov 128   ;;  %s366_s18 = smov 8  }
  0x32   :  { %43 = dma.hbm_to_vmem [thread:$0]  %s449_s2, 512, %s38_s13, [#allocation6], %s365_s0, %s365_s0, %s366_s18  }
  0x33   :  { %356 = dma.done.wait [#allocation3], 128  }
  0x34   :  { %357 = vsyncadd [#allocation3], 4294967168 }
  0x35   :  { %358 = dma.done.wait [#allocation6], 640  }
  0x36   :  { %359 = vsyncadd [#allocation6], 4294966656  ;;  %v367_v0 = vmov 0.0|0.0   ;;  %v368_v1 = vmov 0.0   ;;  %vm369_vm0 = vmmov 0   ;;  %v57_v2 = vld [vmem:[#allocation7] sm:$0xff] }
  0x37   :  { %252 = vmatprep.subr.bf16.mxu0 %v367_v0  ;;  %236 = vmatprep.subr.mxu1 %v368_v1  ;;  %v58_v3 = vld [vmem:[#allocation7 + $0x8] sm:$0xff]  ;;  %v59_v4 = vld [vmem:[#allocation7 + $0x10] sm:$0xff]  ;;  %vm62_vm1 = vcmask 64512   ;;  %v60_v6 = vld [vmem:[#allocation7 + $0x18] sm:$0xff]  ;;  %vm136_vm2 = vcmask 261120   ;;  %s370_s2 = smov [#allocation8]  }
  0x38   :  { %238 = vmatprep.mubr.msk.f32.mxu1 %vm369_vm0, %v368_v1  ;;  %249 = vmatprep.mubr.msk.f32.mxu0 %vm369_vm0, %v368_v1  ;;  %v253_v5 = vpack.c.bf16 %v58_v3, %v57_v2  ;;  %v61_v7 = vld [vmem:[%s450_s3] sm:$0xff]  ;;  %v56_v8 = vld [vmem:[#allocation5] sm:$0xff]  ;;  %v256_v9 = vpack.c.bf16 %v60_v6, %v59_v4  ;;  %s217_s27 = sshll.u32 %s370_s2, 4  ;;  %s218_s27 = int_to_ptr.vmem [resolvable:$true] %s217_s27 }
  0x39   :  { %237 = vmatpush3.msra.mxu1 %v61_v7  ;;  %v55_v10 = vld [vmem:[#allocation2] sm:$0xff]  ;;  %s334_s3 = scalar_lea.vmem %s218_s27, 128  ;;  %p339_p11 = scmp.lt.s32.totalorder %s218_s27, %s218_s27 }
  0x3a   :  { %254 = vmatpush3.bf16.msra.mxu0 %v253_v5  ;;  %239 = vmatmul.mubr.msk.f32.vlgmr.msra.gmra.mrb[0].mxu1 %vm62_vm1, %v56_v8  ;;  %p335_p10 = scmp.ne.s32.totalorder %s218_s27, %s334_s3  ;;  %p340_p12 = scmp.lt.s32.totalorder %s334_s3, %s334_s3 }
  0x3b   :  { %255 = vmatprep.subr.bf16.mxu0 %v367_v0 }
  0x3c   :  { %p341_p13 = por %p340_p12, %p339_p11 }
  0x3e   :  { %257 = vmatpush3.bf16.msra.mxu0 %v256_v9  ;;  %p342_p0 = pnand %p341_p13, %p335_p10 }
  0x41   :  { %250 = vmatmul.mubr.msk.f32.vlgmr.msra.gmra.mrb[0].mxu0 %vm136_vm2, %v55_v10 }
 0x10d   :  { %v132_v11 = vpop.f32.mrb[0].mxu1 }
 0x10e   :  { %v240_v12 = vpop.f32.mrb[1].mxu1 }
 0x114   :  { %v206_v13 = vpop.f32.mrb[0].mxu0 }
 0x115   :  { %v207_v14 = vadd.f32 %v206_v13, %v132_v11  ;;  %v251_v15 = vpop.f32.mrb[1].mxu0 }
 0x117   :  { %210 = vst.msk [vmem:[#allocation8] sm:$0xff] %vm136_vm2, %v207_v14 }
 0x118   :  { %345 = shalt.err (!%p342_p0)
}
 0x119   :  { %s346_s30 = scalar_lea.hbm %s451_s4, 128 }
 0x11a   :  { %p347_p1 = scmp.ne.s32.totalorder %s451_s4, %s346_s30  ;;  %p350_p2 = scmp.lt.u32.totalorder %s346_s30, %s451_s4 }
 0x11c   :  { %p352_p3 = pnand %p350_p2, %p347_p1 }
 0x11e   :  { %355 = shalt.err (!%p352_p3)
}
 0x11f   :  { %220 = dma.vmem_to_hbm [thread:$0]  %s218_s27, 128, %s451_s4, [#allocation4]  }
 0x120   :  { %360 = dma.done.wait [#allocation4], 128  }
 0x121   :  { %361 = vsyncadd [#allocation4], 4294967168 }
 0x122   :  { %224 = vsyncpa [#allocation3], 1 }
 0x123   :  { %225 = vsyncpa [#allocation6], 1 }
 0x124   :  { %226 = vsyncpa [#allocation4], 1 }

</bundles_post_ra>
